<compile_context>
chip_gen: v7x
topology: tpu7x:2x2x1
jax: 0.10.0
libtpu: 0.0.40
codegen_flags: <defaults>
</compile_context>

<pallas_src>
import jax
import jax.numpy as jnp
from jax import lax
from jax.experimental import pallas as pl
from jax.experimental.pallas import tpu as pltpu

# ConvBlock(in_channels=4, out_channels=8), defaults k=3, s=1, p=1, last_block=False
N, C_IN, H, W = 8, 4, 16, 16
C_OUT = 8
K = 3
PAD = 1
HO, WO = H // 2, W // 2
PCOLS = N * HO * WO          # 512 columns per pool-parity block (4 x 128 lanes)
COLS = 4 * PCOLS             # 2048 conv output positions (= N*H*W)
ROWS = K * K * C_IN          # 36  (fused contraction dim)
EPS = 1e-5
NEG_SLOPE = 0.2


def convblock_kernel(p_ref, w_ref, o_ref):
    # --- Conv2d: one fused MXU matmul (bf16 operands, fp32 accumulate) -------
    # Bias omitted: exactly cancelled by the train-mode BN mean subtraction.
    y = jnp.dot(w_ref[...], p_ref[...],
                preferred_element_type=jnp.float32)              # (C_out, 2048) fp32

    # --- BatchNorm2d train-mode batch stats (gamma=1, beta=0, eps=1e-5) ------
    # One-pass sum / sum-of-squares lane reductions over all 2048 positions,
    # folded into a single per-channel scale/shift.
    inv_n = 1.0 / COLS
    mean = jnp.sum(y, axis=1, keepdims=True) * inv_n             # (C_out, 1)
    var = jnp.sum(y * y, axis=1, keepdims=True) * inv_n - mean * mean
    var = jnp.maximum(var, 0.0)                                  # cancellation guard
    scale = lax.rsqrt(var + EPS)                                 # strictly > 0
    shift = -mean * scale

    # --- MaxPool2d(2,2) FIRST, on raw conv outputs ----------------------------
    # Valid: positive-scale affine and LeakyReLU are monotone, so max commutes.
    # The 4 pool parities are 128-aligned 512-wide blocks -> 3 vreg maxima.
    m = jnp.maximum(
        jnp.maximum(y[:, 0 * PCOLS:1 * PCOLS], y[:, 1 * PCOLS:2 * PCOLS]),
        jnp.maximum(y[:, 2 * PCOLS:3 * PCOLS], y[:, 3 * PCOLS:4 * PCOLS]),
    )                                                            # (C_out, 512)

    # --- BN affine + LeakyReLU(0.2) on the pooled block only ------------------
    z = m * scale + shift
    o_ref[...] = jnp.maximum(z, NEG_SLOPE * z)                   # unmasked 512-lane stores


def _im2col_parity_major(x_bf16):
    # Pool-parity-major im2col slab (pure layout plumbing; XLA fuses the
    # pad + stack + transpose into one copy, done in bf16 = half the bytes).
    xpad = jnp.pad(x_bf16, ((0, 0), (0, 0), (PAD, PAD), (PAD, PAD)))     # (N, Cin, 18, 18)
    taps = jnp.stack([xpad[:, :, i:i + H, j:j + W]
                      for i in range(K) for j in range(K)], axis=0)      # (9, N, Cin, H, W)
    taps = taps.reshape(K * K, N, C_IN, HO, 2, WO, 2)                    # (t, n, c, ho, a, wo, b)
    return taps.transpose(0, 2, 4, 6, 1, 3, 5).reshape(ROWS, COLS)       # (36, 2048)


def _conv_block_slab(x_nchw, w_oihw, bias):
    # Conv bias is a per-channel constant -> removed exactly by the train-mode
    # BN mean subtraction (it is also zero-initialized in the module).
    # Must be re-added if BN ever runs in eval mode (running stats).
    del bias

    # bf16 MXU operands; accumulation / stats / output stay fp32 in-kernel.
    p = _im2col_parity_major(x_nchw.astype(jnp.bfloat16))                # (36, 2048) bf16
    wf = jnp.transpose(w_oihw.astype(jnp.bfloat16),
                       (0, 2, 3, 1)).reshape(C_OUT, ROWS)                # (8, 36) bf16

    cost = pl.CostEstimate(
        flops=2 * C_OUT * ROWS * COLS + 8 * C_OUT * COLS,   # matmul + stats/pool/affine
        transcendentals=C_OUT,                              # per-channel rsqrt
        bytes_accessed=ROWS * COLS * 2 + C_OUT * ROWS * 2 + C_OUT * PCOLS * 4,
    )

    return pl.pallas_call(
        convblock_kernel,
        out_shape=jax.ShapeDtypeStruct((C_OUT, PCOLS), jnp.float32),
        in_specs=[
            pl.BlockSpec(memory_space=pltpu.MemorySpace.VMEM),
            pl.BlockSpec(memory_space=pltpu.MemorySpace.VMEM),
        ],
        out_specs=pl.BlockSpec(memory_space=pltpu.MemorySpace.VMEM),
        cost_estimate=cost,
    )(p, wf)


# Lane-dense channel-major output (C_out, N*Ho*Wo): the preferred interface for
# a downstream consumer (avoids the lane-sparse NCHW transpose entirely).
conv_block_slab = jax.jit(_conv_block_slab)


@jax.jit
def conv_block(x_nchw, w_oihw, bias):
    # NCHW facade matching the PyTorch module's forward.  The final transpose
    # is a separate lane-sparse XLA copy about as expensive as the kernel at
    # this size — fuse it into the consumer in a real pipeline.
    out = _conv_block_slab(x_nchw, w_oihw, bias)                         # (C_out, N*Ho*Wo)
    return out.reshape(C_OUT, N, HO, WO).transpose(1, 0, 2, 3)           # NCHW


def reference(x, w, b, quantized_operands=False):
    # Pure-JAX reference of the PyTorch module forward (BN in training mode).
    if quantized_operands:   # model the bf16 MXU operand rounding exactly
        x = x.astype(jnp.bfloat16).astype(jnp.float32)
        w = w.astype(jnp.bfloat16).astype(jnp.float32)
    conv = lax.conv_general_dilated(
        x, w, window_strides=(1, 1), padding=((PAD, PAD), (PAD, PAD)),
        dimension_numbers=('NCHW', 'OIHW', 'NCHW')) + b[None, :, None, None]
    mean = jnp.mean(conv, axis=(0, 2, 3), keepdims=True)
    var = jnp.mean((conv - mean) ** 2, axis=(0, 2, 3), keepdims=True)
    z = (conv - mean) / jnp.sqrt(var + EPS)
    z = jnp.where(z >= 0, z, NEG_SLOPE * z)
    return lax.reduce_window(z, -jnp.inf, lax.max,
                             (1, 1, 2, 2), (1, 1, 2, 2), 'VALID')


if __name__ == "__main__":
    key = jax.random.PRNGKey(0)
    kx, kw = jax.random.split(key)
    # Deterministic init matching ConvBlock.__init__:
    # normal_(weight, std=2/(in_channels*k**2)), zero bias, default BN affine (1, 0).
    std = 2.0 / (C_IN * K ** 2)
    wt = std * jax.random.normal(kw, (C_OUT, C_IN, K, K), dtype=jnp.float32)
    b = jnp.zeros((C_OUT,), dtype=jnp.float32)
    x = jax.random.normal(kx, (N, C_IN, H, W), dtype=jnp.float32)

    out = jax.block_until_ready(conv_block(x, wt, b))
    assert out.shape == (N, C_OUT, HO, WO)

    # Tight check vs. a reference that applies the same bf16 operand rounding
    # (validates the kernel math: conv accumulate, BN stats, pool/affine order).
    ref_q = reference(x, wt, b, quantized_operands=True)
    err_q = float(jnp.max(jnp.abs(out - ref_q)))
    assert jnp.allclose(out, ref_q, atol=2e-4, rtol=2e-4), err_q

    # Loose sanity check vs. the exact fp32 module forward (bf16-operand error).
    ref_f = reference(x, wt, b)
    err_f = float(jnp.max(jnp.abs(out - ref_f)))
    assert jnp.allclose(out, ref_f, atol=5e-2, rtol=5e-2), err_f

    print("KERNEL_OK")
</pallas_src>

<mosaic_0001>
module attributes {stable_mosaic.version = 11 : i64} {
  func.func @convblock_kernel(%arg0: memref<36x2048xbf16, #tpu.memory_space<vmem>>, %arg1: memref<8x36xbf16, #tpu.memory_space<vmem>>, %arg2: memref<8x512xf32, #tpu.memory_space<vmem>>) attributes {dimension_semantics = [], scalar_prefetch = 0 : i64, scratch_operands = 0 : i64, tpu.core_type = #tpu.core_type<tc>} {
    %c0 = arith.constant 0 : index
    %c0_0 = arith.constant 0 : index
    %0 = vector.load %arg1[%c0, %c0_0] : memref<8x36xbf16, #tpu.memory_space<vmem>>, vector<8x36xbf16>
    %c0_1 = arith.constant 0 : index
    %c0_2 = arith.constant 0 : index
    %1 = vector.load %arg0[%c0_1, %c0_2] : memref<36x2048xbf16, #tpu.memory_space<vmem>>, vector<36x2048xbf16>
    %cst = arith.constant dense<0.000000e+00> : vector<8x2048xf32>
    %2 = tpu.matmul %0, %1, %cst {dimension_numbers = #tpu.dot_dimension_numbers<[1], [0], [0], [1], [0, 0, 1, 1], [], []>} : vector<8x36xbf16>, vector<36x2048xbf16>, vector<8x2048xf32> -> vector<8x2048xf32>
    %cst_3 = arith.constant dense<0.000000e+00> : vector<8xf32>
    %3 = vector.multi_reduction <add>, %2, %cst_3 [1] : vector<8x2048xf32> to vector<8xf32>
    %4 = vector.shape_cast %3 : vector<8xf32> to vector<8x1xf32>
    %cst_4 = arith.constant 4.8828125E-4 : f32
    %5 = vector.broadcast %cst_4 : f32 to vector<8x1xf32>
    %6 = arith.mulf %4, %5 : vector<8x1xf32>
    %7 = arith.mulf %2, %2 : vector<8x2048xf32>
    %cst_5 = arith.constant dense<0.000000e+00> : vector<8xf32>
    %8 = vector.multi_reduction <add>, %7, %cst_5 [1] : vector<8x2048xf32> to vector<8xf32>
    %9 = vector.shape_cast %8 : vector<8xf32> to vector<8x1xf32>
    %cst_6 = arith.constant 4.8828125E-4 : f32
    %10 = vector.broadcast %cst_6 : f32 to vector<8x1xf32>
    %11 = arith.mulf %9, %10 : vector<8x1xf32>
    %12 = arith.mulf %6, %6 : vector<8x1xf32>
    %13 = arith.subf %11, %12 : vector<8x1xf32>
    %cst_7 = arith.constant 0.000000e+00 : f32
    %14 = vector.broadcast %cst_7 : f32 to vector<8x1xf32>
    %15 = arith.maximumf %13, %14 : vector<8x1xf32>
    %cst_8 = arith.constant 9.99999974E-6 : f32
    %16 = vector.broadcast %cst_8 : f32 to vector<8x1xf32>
    %17 = arith.addf %15, %16 : vector<8x1xf32>
    %18 = math.rsqrt %17 : vector<8x1xf32>
    %cst_9 = arith.constant 0.000000e+00 : f32
    %19 = vector.broadcast %cst_9 : f32 to vector<8x1xf32>
    %20 = arith.subf %19, %6 : vector<8x1xf32>
    %21 = arith.mulf %20, %18 : vector<8x1xf32>
    %22 = vector.extract_strided_slice %2 {offsets = [0, 0], sizes = [8, 512], strides = [1, 1]} : vector<8x2048xf32> to vector<8x512xf32>
    %23 = vector.extract_strided_slice %2 {offsets = [0, 512], sizes = [8, 512], strides = [1, 1]} : vector<8x2048xf32> to vector<8x512xf32>
    %24 = arith.maximumf %22, %23 : vector<8x512xf32>
    %25 = vector.extract_strided_slice %2 {offsets = [0, 1024], sizes = [8, 512], strides = [1, 1]} : vector<8x2048xf32> to vector<8x512xf32>
    %26 = vector.extract_strided_slice %2 {offsets = [0, 1536], sizes = [8, 512], strides = [1, 1]} : vector<8x2048xf32> to vector<8x512xf32>
    %27 = arith.maximumf %25, %26 : vector<8x512xf32>
    %28 = arith.maximumf %24, %27 : vector<8x512xf32>
    %29 = vector.broadcast %18 : vector<8x1xf32> to vector<8x512xf32>
    %30 = arith.mulf %28, %29 : vector<8x512xf32>
    %31 = vector.broadcast %21 : vector<8x1xf32> to vector<8x512xf32>
    %32 = arith.addf %30, %31 : vector<8x512xf32>
    %cst_10 = arith.constant 2.000000e-01 : f32
    %33 = vector.broadcast %cst_10 : f32 to vector<8x512xf32>
    %34 = arith.mulf %33, %32 : vector<8x512xf32>
    %35 = arith.maximumf %32, %34 : vector<8x512xf32>
    %c0_11 = arith.constant 0 : index
    %c0_12 = arith.constant 0 : index
    %36 = vector.load %arg2[%c0_11, %c0_12] : memref<8x512xf32, #tpu.memory_space<vmem>>, vector<8x512xf32>
    tpu.vector_store %arg2[%c0_11, %c0_12], %35 {strides = array<i32>} : memref<8x512xf32, #tpu.memory_space<vmem>>, vector<8x512xf32>,
    return
  }
}

</mosaic_0001>

<bundles_post_ra>
// kernel: conv_block.1
= control target key start
LH: loop header
LB: loop body
LE: loop exit
PB: predicated region body
PF: predicated region fallthrough
CT: control target
= control target key end

     0   :  { %v812_v3 = vmov 0   ;;  %vm257_vm0 = vcmask 1041408   ;;  %vm253_vm1 = vcmask 293888   ;;  %s1029_s0 = inlined_call_operand.vmem [shape: bf16[36,2048], index: 0, kind: input, shape index: {}]   ;;  %s1030_s1 = inlined_call_operand.vmem [shape: bf16[8,36], index: 1, kind: input, shape index: {}]   ;;  %s1031_s2 = inlined_call_operand.vmem [shape: f32[8,512], index: 2, kind: output, shape index: {}]  }
   0x1   :  { %v13_v0 = vld [vmem:[%s1029_s0] sm:$0xff]  ;;  %v14_v2 = vld [vmem:[%s1029_s0 + $0x8] sm:$0xff]  ;;  %338 = vmatprep.mubr.bf16.mxu0 %v812_v3  ;;  %379 = vmatprep.mubr.bf16.mxu1 %v812_v3  ;;  %v15_v23 = vld [vmem:[%s1029_s0 + $0x10] sm:$0xff] }
   0x2   :  { %v21_v1 = vld [vmem:[%s1029_s0 + $0x40] sm:$0xff]  ;;  %v22_v5 = vld [vmem:[%s1029_s0 + $0x48] sm:$0xff]  ;;  %v23_v24 = vld [vmem:[%s1029_s0 + $0x50] sm:$0xff] }
   0x3   :  { %v730_v4 = vcombine.high %v13_v0, %v21_v1  ;;  %v729_v6 = vcombine.low %v13_v0, %v21_v1  ;;  %v29_v7 = vld [vmem:[%s1029_s0 + $0x80] sm:$0xff]  ;;  %v732_v9 = vcombine.high %v14_v2, %v22_v5  ;;  %v731_v10 = vcombine.low %v14_v2, %v22_v5  ;;  %v30_v12 = vld [vmem:[%s1029_s0 + $0x88] sm:$0xff]  ;;  %v16_v25 = vld [vmem:[%s1029_s0 + $0x18] sm:$0xff] }
   0x4   :  { %v37_v8 = vld [vmem:[%s1029_s0 + $0xc0] sm:$0xff]  ;;  %v38_v13 = vld [vmem:[%s1029_s0 + $0xc8] sm:$0xff]  ;;  %v24_v26 = vld [vmem:[%s1029_s0 + $0x58] sm:$0xff]  ;;  %v734_v28 = vcombine.high %v15_v23, %v23_v24  ;;  %v733_v36 = vcombine.low %v15_v23, %v23_v24 }
   0x5   :  { %v746_v11 = vcombine.high %v29_v7, %v37_v8  ;;  %v45_v14 = vld [vmem:[%s1029_s0 + $0x100] sm:$0x33]  ;;  %306 = vmatprep.subr.bf16.mxu0 %v730_v4  ;;  %v748_v15 = vcombine.high %v30_v12, %v38_v13  ;;  %v46_v16 = vld [vmem:[%s1029_s0 + $0x108] sm:$0x33]  ;;  %347 = vmatprep.subr.bf16.mxu1 %v732_v9  ;;  %v745_v17 = vcombine.low %v29_v7, %v37_v8  ;;  %v31_v31 = vld [vmem:[%s1029_s0 + $0x90] sm:$0xff] }
   0x6   :  { %307 = vmatpush1.bf16.msra.mxu0 %v729_v6  ;;  %348 = vmatpush1.bf16.msra.mxu1 %v731_v10  ;;  %v747_v18 = vcombine.low %v30_v12, %v38_v13  ;;  %v762_v19 = vcombine.high %v45_v14, %v45_v14  ;;  %v761_v20 = vcombine.low %v45_v14, %v45_v14  ;;  %v39_v32 = vld [vmem:[%s1029_s0 + $0xd0] sm:$0xff]  ;;  %v32_v33 = vld [vmem:[%s1029_s0 + $0x98] sm:$0xff]  ;;  %v891_v35 = vld [vmem:[%s1030_s1] sm:$0xf] }
   0x7   :  { %308 = vmatprep.subr.bf16.mxu0 %v746_v11  ;;  %349 = vmatprep.subr.bf16.mxu1 %v748_v15  ;;  %v764_v21 = vcombine.high %v46_v16, %v46_v16  ;;  %v763_v22 = vcombine.low %v46_v16, %v46_v16  ;;  %v736_v30 = vcombine.high %v16_v25, %v24_v26  ;;  %v40_v34 = vld [vmem:[%s1029_s0 + $0xd8] sm:$0xff]  ;;  %v47_v40 = vld [vmem:[%s1029_s0 + $0x110] sm:$0x33]  ;;  %v17_v48 = vld [vmem:[%s1029_s0 + $0x20] sm:$0xff] }
   0x8   :  { %v259_v27 = vsel %vm257_vm0, %v761_v20, 0  ;;  %v735_v37 = vcombine.low %v16_v25, %v24_v26  ;;  %v750_v38 = vcombine.high %v31_v31, %v39_v32  ;;  %v752_v39 = vcombine.high %v32_v33, %v40_v34  ;;  %v48_v41 = vld [vmem:[%s1029_s0 + $0x118] sm:$0x33]  ;;  %v25_v49 = vld [vmem:[%s1029_s0 + $0x60] sm:$0xff]  ;;  %v18_v50 = vld [vmem:[%s1029_s0 + $0x28] sm:$0xff] }
   0x9   :  { %v265_v29 = vsel %vm257_vm0, %v763_v22, 0  ;;  %v749_v42 = vcombine.low %v31_v31, %v39_v32  ;;  %v751_v43 = vcombine.low %v32_v33, %v40_v34  ;;  %v766_v44 = vcombine.high %v47_v40, %v47_v40  ;;  %v26_v51 = vld [vmem:[%s1029_s0 + $0x68] sm:$0xff]  ;;  %v33_v56 = vld [vmem:[%s1029_s0 + $0xa0] sm:$0xff]  ;;  %v19_v9 = vld [vmem:[%s1029_s0 + $0x30] sm:$0xff] }
   0xa   :  { %309 = vmatpush1.bf16.msra.mxu0 %v745_v17  ;;  %350 = vmatpush1.bf16.msra.mxu1 %v747_v18  ;;  %v765_v45 = vcombine.low %v47_v40, %v47_v40  ;;  %v768_v46 = vcombine.high %v48_v41, %v48_v41  ;;  %v767_v47 = vcombine.low %v48_v41, %v48_v41  ;;  %v41_v57 = vld [vmem:[%s1029_s0 + $0xe0] sm:$0xff]  ;;  %v34_v58 = vld [vmem:[%s1029_s0 + $0xa8] sm:$0xff]  ;;  %v27_v10 = vld [vmem:[%s1029_s0 + $0x70] sm:$0xff] }
   0xb   :  { %777 = vmatprep.subr.msk.bf16.mxu0 %vm257_vm0, %v762_v19  ;;  %779 = vmatprep.subr.msk.bf16.mxu1 %vm257_vm0, %v764_v21  ;;  %v738_v53 = vcombine.high %v17_v48, %v25_v49  ;;  %v740_v55 = vcombine.high %v18_v50, %v26_v51  ;;  %v42_v59 = vld [vmem:[%s1029_s0 + $0xe8] sm:$0xff]  ;;  %v737_v60 = vcombine.low %v17_v48, %v25_v49  ;;  %v49_v0 = vld [vmem:[%s1029_s0 + $0x120] sm:$0x33]  ;;  %v20_v11 = vld [vmem:[%s1029_s0 + $0x38] sm:$0xff] }
   0xc   :  { %v271_v52 = vsel %vm257_vm0, %v765_v45, 0  ;;  %v277_v54 = vsel %vm257_vm0, %v767_v47, 0  ;;  %v739_v61 = vcombine.low %v18_v50, %v26_v51  ;;  %v754_v62 = vcombine.high %v33_v56, %v41_v57  ;;  %v50_v1 = vld [vmem:[%s1029_s0 + $0x128] sm:$0x33]  ;;  %v28_v12 = vld [vmem:[%s1029_s0 + $0x78] sm:$0xff]  ;;  %v35_v17 = vld [vmem:[%s1029_s0 + $0xb0] sm:$0xff] }
   0xd   :  { %v756_v63 = vcombine.high %v34_v58, %v42_v59  ;;  %v753_v2 = vcombine.low %v33_v56, %v41_v57  ;;  %v755_v4 = vcombine.low %v34_v58, %v42_v59  ;;  %v770_v5 = vcombine.high %v49_v0, %v49_v0  ;;  %v43_v18 = vld [vmem:[%s1029_s0 + $0xf0] sm:$0xff]  ;;  %v36_v19 = vld [vmem:[%s1029_s0 + $0xb8] sm:$0xff] }
   0xe   :  { %311 = vmatpush1.bf16.msra.mxu0 %v259_v27  ;;  %352 = vmatpush1.bf16.msra.mxu1 %v265_v29  ;;  %v769_v6 = vcombine.low %v49_v0, %v49_v0  ;;  %v772_v7 = vcombine.high %v50_v1, %v50_v1  ;;  %v771_v8 = vcombine.low %v50_v1, %v50_v1  ;;  %v44_v20 = vld [vmem:[%s1029_s0 + $0xf8] sm:$0xff]  ;;  %v51_v25 = vld [vmem:[%s1029_s0 + $0x130] sm:$0x33] }
   0xf   :  { %388 = vmatprep.subr.bf16.mxu0 %v734_v28  ;;  %429 = vmatprep.subr.bf16.mxu1 %v736_v30  ;;  %v742_v14 = vcombine.high %v19_v9, %v27_v10  ;;  %v744_v16 = vcombine.high %v20_v11, %v28_v12  ;;  %v741_v21 = vcombine.low %v19_v9, %v27_v10  ;;  %v52_v26 = vld [vmem:[%s1029_s0 + $0x138] sm:$0x33] }
  0x10   :  { %v283_v13 = vsel %vm257_vm0, %v769_v6, 0  ;;  %v289_v15 = vsel %vm257_vm0, %v771_v8, 0  ;;  %v743_v22 = vcombine.low %v20_v11, %v28_v12  ;;  %v758_v23 = vcombine.high %v35_v17, %v43_v18 }
  0x11   :  { %778 = vmatmul.mubr.msk.bf16.vlgmr.msra.gmra.mrb[0].mxu0 %vm253_vm1, %v891_v35  ;;  %780 = vmatmul.mubr.msk.bf16.vlgmr.msra.gmra.mrb[0].mxu1 %vm253_vm1, %v891_v35  ;;  %v760_v24 = vcombine.high %v36_v19, %v44_v20  ;;  %v757_v27 = vcombine.low %v35_v17, %v43_v18  ;;  %v759_v28 = vcombine.low %v36_v19, %v44_v20 }
  0x12   :  { %389 = vmatpush1.bf16.msra.mxu0 %v733_v36  ;;  %430 = vmatpush1.bf16.msra.mxu1 %v735_v37  ;;  %v774_v29 = vcombine.high %v51_v25, %v51_v25  ;;  %v773_v30 = vcombine.low %v51_v25, %v51_v25  ;;  %v776_v31 = vcombine.high %v52_v26, %v52_v26 }
  0x13   :  { %390 = vmatprep.subr.bf16.mxu0 %v750_v38  ;;  %431 = vmatprep.subr.bf16.mxu1 %v752_v39  ;;  %v775_v32 = vcombine.low %v52_v26, %v52_v26 }
  0x14   :  { %420 = vmatprep.mubr.bf16.mxu0 %v812_v3  ;;  %461 = vmatprep.mubr.bf16.mxu1 %v812_v3  ;;  %v295_v33 = vsel %vm257_vm0, %v773_v30, 0 }
  0x15   :  { %v301_v34 = vsel %vm257_vm0, %v775_v32, 0 }
  0x16   :  { %391 = vmatpush1.bf16.msra.mxu0 %v749_v42  ;;  %432 = vmatpush1.bf16.msra.mxu1 %v751_v43 }
  0x17   :  { %781 = vmatprep.subr.msk.bf16.mxu0 %vm257_vm0, %v766_v44  ;;  %783 = vmatprep.subr.msk.bf16.mxu1 %vm257_vm0, %v768_v46 }
  0x1a   :  { %393 = vmatpush1.bf16.msra.mxu0 %v271_v52  ;;  %434 = vmatpush1.bf16.msra.mxu1 %v277_v54 }
  0x1b   :  { %470 = vmatprep.subr.bf16.mxu0 %v738_v53  ;;  %511 = vmatprep.subr.bf16.mxu1 %v740_v55 }
  0x1d   :  { %782 = vmatmul.mubr.msk.bf16.vlgmr.msra.gmra.mrb[4].mxu0 %vm253_vm1, %v891_v35  ;;  %784 = vmatmul.mubr.msk.bf16.vlgmr.msra.gmra.mrb[4].mxu1 %vm253_vm1, %v891_v35 }
  0x1e   :  { %471 = vmatpush1.bf16.msra.mxu0 %v737_v60  ;;  %512 = vmatpush1.bf16.msra.mxu1 %v739_v61 }
  0x1f   :  { %472 = vmatprep.subr.bf16.mxu0 %v754_v62  ;;  %513 = vmatprep.subr.bf16.mxu1 %v756_v63 }
  0x20   :  { %502 = vmatprep.mubr.bf16.mxu0 %v812_v3  ;;  %543 = vmatprep.mubr.bf16.mxu1 %v812_v3 }
  0x22   :  { %473 = vmatpush1.bf16.msra.mxu0 %v753_v2  ;;  %514 = vmatpush1.bf16.msra.mxu1 %v755_v4 }
  0x23   :  { %785 = vmatprep.subr.msk.bf16.mxu0 %vm257_vm0, %v770_v5  ;;  %787 = vmatprep.subr.msk.bf16.mxu1 %vm257_vm0, %v772_v7 }
  0x26   :  { %475 = vmatpush1.bf16.msra.mxu0 %v283_v13  ;;  %516 = vmatpush1.bf16.msra.mxu1 %v289_v15 }
  0x27   :  { %552 = vmatprep.subr.bf16.mxu0 %v742_v14  ;;  %593 = vmatprep.subr.bf16.mxu1 %v744_v16 }
  0x29   :  { %786 = vmatmul.mubr.msk.bf16.vlgmr.msra.gmra.mrb[8].mxu0 %vm253_vm1, %v891_v35  ;;  %788 = vmatmul.mubr.msk.bf16.vlgmr.msra.gmra.mrb[8].mxu1 %vm253_vm1, %v891_v35 }
  0x2a   :  { %553 = vmatpush1.bf16.msra.mxu0 %v741_v21  ;;  %594 = vmatpush1.bf16.msra.mxu1 %v743_v22 }
  0x2b   :  { %554 = vmatprep.subr.bf16.mxu0 %v758_v23  ;;  %595 = vmatprep.subr.bf16.mxu1 %v760_v24 }
  0x2c   :  { %584 = vmatprep.mubr.bf16.mxu0 %v812_v3  ;;  %625 = vmatprep.mubr.bf16.mxu1 %v812_v3 }
  0x2e   :  { %555 = vmatpush1.bf16.msra.mxu0 %v757_v27  ;;  %596 = vmatpush1.bf16.msra.mxu1 %v759_v28 }
  0x2f   :  { %789 = vmatprep.subr.msk.bf16.mxu0 %vm257_vm0, %v774_v29  ;;  %791 = vmatprep.subr.msk.bf16.mxu1 %vm257_vm0, %v776_v31 }
  0x32   :  { %557 = vmatpush1.bf16.msra.mxu0 %v295_v33  ;;  %598 = vmatpush1.bf16.msra.mxu1 %v301_v34 }
  0x35   :  { %790 = vmatmul.mubr.msk.bf16.vlgmr.msra.gmra.mrb[12].mxu0 %vm253_vm1, %v891_v35  ;;  %792 = vmatmul.mubr.msk.bf16.vlgmr.msra.gmra.mrb[12].mxu1 %vm253_vm1, %v891_v35 }
  0xe4   :  { %v993_v36 = vpop.f32.mrb[0].mxu0  ;;  %v999_v38 = vpop.f32.mrb[0].mxu1 }
  0xe5   :  { %v652_v3 = vmul.f32 %v993_v36, %v993_v36  ;;  %v997_v37 = vpop.f32.mrb[1].mxu0  ;;  %v654_v42 = vmul.f32 %v999_v38, %v999_v38  ;;  %v1007_v35 = vpop.f32.mrb[1].mxu1 }
  0xe6   :  { %v634_v39 = vadd.f32 %v997_v37, %v993_v36  ;;  %v653_v40 = vmul.f32 %v997_v37, %v997_v37  ;;  %v344_v41 = vpop.f32.mrb[2].mxu0  ;;  %v385_v44 = vpop.f32.mrb[2].mxu1  ;;  %v655_v47 = vmul.f32 %v1007_v35, %v1007_v35 }
  0xe7   :  { %v345_v43 = vpop.f32.mrb[3].mxu0  ;;  %v386_v48 = vpop.f32.mrb[3].mxu1 }
  0xe8   :  { %v668_v45 = vadd.f32 %v653_v40, %v652_v3  ;;  %v635_v46 = vadd.f32 %v634_v39, %v999_v38 }
  0xea   :  { %v669_v49 = vadd.f32 %v668_v45, %v654_v42  ;;  %v636_v50 = vadd.f32 %v635_v46, %v1007_v35 }
  0xec   :  { %v670_v51 = vadd.f32 %v669_v49, %v655_v47 }
  0xf0   :  { %v422_v52 = vpop.f32.mrb[4].mxu0  ;;  %v463_v56 = vpop.f32.mrb[4].mxu1 }
  0xf1   :  { %v637_v53 = vadd.f32 %v636_v50, %v422_v52  ;;  %v656_v54 = vmul.f32 %v422_v52, %v422_v52  ;;  %v693_v55 = vmax.f32 %v993_v36, %v422_v52  ;;  %v424_v57 = vpop.f32.mrb[5].mxu0  ;;  %v695_v58 = vmax.f32 %v999_v38, %v463_v56  ;;  %v465_v61 = vpop.f32.mrb[5].mxu1 }
  0xf2   :  { %v657_v59 = vmul.f32 %v424_v57, %v424_v57  ;;  %v694_v60 = vmax.f32 %v997_v37, %v424_v57  ;;  %v426_v62 = vpop.f32.mrb[6].mxu0  ;;  %v658_v0 = vmul.f32 %v463_v56, %v463_v56  ;;  %v696_v2 = vmax.f32 %v1007_v35, %v465_v61  ;;  %v467_v5 = vpop.f32.mrb[6].mxu1 }
  0xf3   :  { %v671_v63 = vadd.f32 %v670_v51, %v656_v54  ;;  %v638_v1 = vadd.f32 %v637_v53, %v424_v57  ;;  %v427_v4 = vpop.f32.mrb[7].mxu0  ;;  %v468_v6 = vpop.f32.mrb[7].mxu1  ;;  %v659_v9 = vmul.f32 %v465_v61, %v465_v61 }
  0xf5   :  { %v672_v7 = vadd.f32 %v671_v63, %v657_v59  ;;  %v639_v8 = vadd.f32 %v638_v1, %v463_v56 }
  0xf7   :  { %v640_v10 = vadd.f32 %v639_v8, %v465_v61  ;;  %v673_v11 = vadd.f32 %v672_v7, %v658_v0 }
  0xf9   :  { %v674_v12 = vadd.f32 %v673_v11, %v659_v9 }
  0xfc   :  { %v504_v13 = vpop.f32.mrb[8].mxu0  ;;  %v545_v17 = vpop.f32.mrb[8].mxu1 }
  0xfd   :  { %v641_v14 = vadd.f32 %v640_v10, %v504_v13  ;;  %v660_v15 = vmul.f32 %v504_v13, %v504_v13  ;;  %v506_v16 = vpop.f32.mrb[9].mxu0  ;;  %v547_v20 = vpop.f32.mrb[9].mxu1  ;;  %v662_v23 = vmul.f32 %v545_v17, %v545_v17 }
  0xfe   :  { %v661_v18 = vmul.f32 %v506_v16, %v506_v16  ;;  %v508_v19 = vpop.f32.mrb[10].mxu0  ;;  %v549_v25 = vpop.f32.mrb[10].mxu1  ;;  %v663_v29 = vmul.f32 %v547_v20, %v547_v20 }
  0xff   :  { %v675_v21 = vadd.f32 %v674_v12, %v660_v15  ;;  %v642_v22 = vadd.f32 %v641_v14, %v506_v16  ;;  %v509_v24 = vpop.f32.mrb[11].mxu0  ;;  %v550_v26 = vpop.f32.mrb[11].mxu1 }
 0x101   :  { %v676_v27 = vadd.f32 %v675_v21, %v661_v18  ;;  %v643_v28 = vadd.f32 %v642_v22, %v545_v17 }
 0x103   :  { %v677_v30 = vadd.f32 %v676_v27, %v662_v23  ;;  %v644_v31 = vadd.f32 %v643_v28, %v547_v20 }
 0x105   :  { %v678_v32 = vadd.f32 %v677_v30, %v663_v29 }
 0x108   :  { %v586_v33 = vpop.f32.mrb[12].mxu0  ;;  %v627_v37 = vpop.f32.mrb[12].mxu1 }
 0x109   :  { %v645_v34 = vadd.f32 %v644_v31, %v586_v33  ;;  %v664_v36 = vmul.f32 %v586_v33, %v586_v33  ;;  %v697_v3 = vmax.f32 %v504_v13, %v586_v33  ;;  %v588_v38 = vpop.f32.mrb[13].mxu0  ;;  %v666_v39 = vmul.f32 %v627_v37, %v627_v37  ;;  %v629_v35 = vpop.f32.mrb[13].mxu1 }
 0x10a   :  { %v699_v40 = vmax.f32 %v545_v17, %v627_v37  ;;  %v665_v41 = vmul.f32 %v588_v38, %v588_v38  ;;  %v698_v42 = vmax.f32 %v506_v16, %v588_v38  ;;  %v590_v43 = vpop.f32.mrb[14].mxu0  ;;  %v700_v47 = vmax.f32 %v547_v20, %v629_v35  ;;  %v631_v49 = vpop.f32.mrb[14].mxu1 }
 0x10b   :  { %v679_v44 = vadd.f32 %v678_v32, %v664_v36  ;;  %v701_v45 = vmax.f32 %v693_v55, %v697_v3  ;;  %v646_v46 = vadd.f32 %v645_v34, %v588_v38  ;;  %v591_v48 = vpop.f32.mrb[15].mxu0  ;;  %v632_v52 = vpop.f32.mrb[15].mxu1  ;;  %v667_v59 = vmul.f32 %v629_v35, %v629_v35 }
 0x10c   :  { %v703_v50 = vmax.f32 %v695_v58, %v699_v40  ;;  %v702_v51 = vmax.f32 %v694_v60, %v698_v42  ;;  %v704_v53 = vmax.f32 %v696_v2, %v700_v47 }
 0x10d   :  { %v647_v54 = vadd.f32 %v646_v46, %v627_v37  ;;  %v680_v56 = vadd.f32 %v679_v44, %v665_v41 }
 0x10f   :  { %v648_v57 = vadd.f32 %v647_v54, %v629_v35  ;;  %v681_v61 = vadd.f32 %v680_v56, %v666_v39 }
 0x111   :  { %649 = vadd.xlane.f32.xlu0 %v648_v57  ;;  %v682_v62 = vadd.f32 %v681_v61, %v667_v59 }
 0x115   :  { %683 = vadd.xlane.f32.xlu0 %v682_v62 }
 0x19e   :  { %v650_v63 = vpop.xlane.xlu0 %649 }
 0x19f   :  { %v651_v0 = vmul.f32 0.00048828125, %v650_v63 }
 0x1a1   :  { %v686_v55 = vmul.f32 %v651_v0, %v651_v0  ;;  %v691_v58 = vsub.f32 0.0, %v651_v0 }
 0x1a2   :  { %v684_v1 = vpop.xlane.xlu0 %683 }
 0x1a3   :  { %v685_v4 = vmul.f32 0.00048828125, %v684_v1 }
 0x1a5   :  { %v687_v5 = vsub.f32 %v685_v4, %v686_v55 }
 0x1a7   :  { %v688_v6 = vmax.f32 %v687_v5, 0.0 }
 0x1a9   :  { %v689_v7 = vadd.f32 1e-05, %v688_v6 }
 0x1ab   :  { %810 = vrsqrt.f32 %v689_v7 }
 0x1b5   :  { %v811_v60 = vpop.eup %810 }
 0x1b6   :  { %v692_v2 = vmul.f32 %v811_v60, %v691_v58  ;;  %v705_v8 = vmul.f32 %v811_v60, %v701_v45  ;;  %v706_v9 = vmul.f32 %v811_v60, %v702_v51  ;;  %v707_v10 = vmul.f32 %v811_v60, %v703_v50 }
 0x1b7   :  { %v708_v11 = vmul.f32 %v811_v60, %v704_v53 }
 0x1b8   :  { %v709_v12 = vadd.f32 %v705_v8, %v692_v2  ;;  %v710_v13 = vadd.f32 %v706_v9, %v692_v2  ;;  %v711_v14 = vadd.f32 %v707_v10, %v692_v2 }
 0x1b9   :  { %v712_v15 = vadd.f32 %v708_v11, %v692_v2 }
 0x1ba   :  { %v713_v16 = vmul.f32 0.2, %v709_v12  ;;  %v714_v17 = vmul.f32 0.2, %v710_v13  ;;  %v715_v18 = vmul.f32 0.2, %v711_v14 }
 0x1bb   :  { %v716_v19 = vmul.f32 0.2, %v712_v15 }
 0x1bc   :  { %v717_v20 = vmax.f32 %v709_v12, %v713_v16  ;;  %v718_v21 = vmax.f32 %v710_v13, %v714_v17  ;;  %v719_v22 = vmax.f32 %v711_v14, %v715_v18 }
 0x1bd   :  { %v720_v23 = vmax.f32 %v712_v15, %v716_v19 }
 0x1be   :  { %721 = vst [vmem:[%s1031_s2] sm:$0xff] %v717_v20  ;;  %722 = vst [vmem:[%s1031_s2 + $0x8] sm:$0xff] %v718_v21 }
 0x1bf   :  { %723 = vst [vmem:[%s1031_s2 + $0x10] sm:$0xff] %v719_v22  ;;  %724 = vst [vmem:[%s1031_s2 + $0x18] sm:$0xff] %v720_v23 }

</bundles_post_ra>
